<compile_context>
chip_gen: v6e
topology: v6e:2x2x1
jax: 0.10.0
libtpu: 0.0.40
codegen_flags: <defaults>
</compile_context>

<pallas_src>
import math
import numpy as np
import jax
import jax.numpy as jnp
from jax import lax
from jax.experimental import pallas as pl
from jax.experimental.pallas import tpu as pltpu


# ------------------------------------------------------------------ helpers --
def _bilinear_vector(kernel_size: int) -> np.ndarray:
    # 1-D factor of fill_up_weights(): w[i, j] = a[i] * a[j] (separable).
    f = math.ceil(kernel_size / 2)
    c = (2 * f - 1 - f % 2) / (2.0 * f)
    return np.array([1.0 - abs(i / f - c) for i in range(kernel_size)],
                    dtype=np.float32)


def _make_up_matrix(in_size: int, kernel_size: int = 16, stride: int = 8,
                    padding: int = 4) -> np.ndarray:
    # U[o, i] = a[o + padding - stride*i] (0 outside kernel range) so that
    # y = U_h @ x @ U_w^T  ==  depthwise ConvTranspose2d(x, bilinear w, 16, 8, 4).
    a = _bilinear_vector(kernel_size)
    out_size = (in_size - 1) * stride - 2 * padding + kernel_size
    U = np.zeros((out_size, in_size), dtype=np.float32)
    for o in range(out_size):
        for i in range(in_size):
            k = o + padding - stride * i
            if 0 <= k < kernel_size:
                U[o, i] = a[k]
    return U


# ------------------------------------------------------------------ kernels --
def _seg_kernel(x_ref, w_ref, b_ref, o_f32_ref, o_bf16_ref):
    # 1x1 conv as (C, cin) @ (cin, TP): pixels on the lane axis (lane-dense).
    x = x_ref[0].astype(w_ref.dtype)                          # (cin, TP) bf16
    acc = jnp.dot(w_ref[...], x,
                  preferred_element_type=jnp.float32)         # (C, TP) f32 acc
    acc = acc + b_ref[...]
    o_f32_ref[0] = acc                                        # API output (f32)
    o_bf16_ref[0] = acc.astype(o_bf16_ref.dtype)              # feed for upsample


def _up_logsoftmax_kernel(x_ref, u_ref, ut_ref, o_ref):
    # Fused depthwise bilinear x8 transposed conv + channel log-softmax.
    #   x_ref : (1, C, H, W)  bf16   all channels of one image's seg map
    #   u_ref : (TOH, H)      bf16   rows of U_h for this OH tile
    #   ut_ref: (W, TOW)      bf16   columns of U_w^T for this OW tile
    #   o_ref : (1, C, TOH, TOW)
    _, C, H, W = x_ref.shape
    TOW = ut_ref.shape[1]

    x = x_ref[0]                                              # (C, H, W) bf16
    ut = ut_ref[...]                                          # (W, TOW) bf16

    # --- W contraction first (lane-dense intermediate); keep it in f32. ---
    if H % 8 == 0:
        # Batch all channels in one matmul: (C*H, W) @ (W, TOW).
        tmp = jnp.dot(x.reshape(C * H, W), ut,
                      preferred_element_type=jnp.float32)     # (C*H, TOW) f32
        tmp = tmp.reshape(C, H, TOW)
    else:
        ut_b = jnp.broadcast_to(ut, (C, W, TOW))
        tmp = lax.dot_general(x, ut_b,
                              dimension_numbers=(((2,), (1,)), ((0,), (0,))),
                              preferred_element_type=jnp.float32)  # (C, H, TOW)

    # --- H contraction, batched over channels (single MXU op, f32). ---
    # NOTE: U has <=2 nonzeros per output row (k=16, s=8); if this kernel ever
    # becomes compute-bound (bf16 output lifts the writeback bound), this dense
    # matmul could be replaced by 2 gathered-row VPU multiply-adds.
    u = u_ref[...].astype(jnp.float32)                        # (TOH, H)
    u_b = jnp.broadcast_to(u, (C,) + u.shape)                 # (C, TOH, H)
    ys = lax.dot_general(u_b, tmp,
                         dimension_numbers=(((2,), (1,)), ((0,), (0,))),
                         preferred_element_type=jnp.float32)  # (C, TOH, TOW)

    # --- numerically stable log-softmax over channels (axis 0), f32 math. ---
    m = jnp.max(ys, axis=0, keepdims=True)                    # (1, TOH, TOW)
    lse = jnp.log(jnp.sum(jnp.exp(ys - m), axis=0, keepdims=True))
    o_ref[0] = (ys - m - lse).astype(o_ref.dtype)


# ----------------------------------------------------------- pallas wrappers --
def seg_conv1x1(x_feat, w, b, *, pixel_tile=2048,
                vmem_limit_bytes=32 * 1024 * 1024):
    """x_feat (N,cin,H,W) f32 -> (seg f32 (N,C,H,W), seg bf16 (N,C,H,W))."""
    N, cin, H, W = x_feat.shape
    C = w.shape[0]
    P = H * W
    tp = min(pixel_tile, P)
    if tp < P:                            # lane-dense tiles (multiple of 128)
        tp = max(128, (tp // 128) * 128)
    x = x_feat.reshape(N, cin, P)         # contiguous reshape, no data movement
    w_bf16 = w.astype(jnp.bfloat16)       # cast once, outside the grid

    out_f32, out_bf16 = pl.pallas_call(
        _seg_kernel,
        out_shape=(jax.ShapeDtypeStruct((N, C, P), jnp.float32),
                   jax.ShapeDtypeStruct((N, C, P), jnp.bfloat16)),
        grid=(N, pl.cdiv(P, tp)),
        in_specs=[pl.BlockSpec((1, cin, tp), lambda n, j: (n, 0, j)),
                  pl.BlockSpec((C, cin), lambda n, j: (0, 0)),
                  pl.BlockSpec((C, 1), lambda n, j: (0, 0))],
        out_specs=(pl.BlockSpec((1, C, tp), lambda n, j: (n, 0, j)),
                   pl.BlockSpec((1, C, tp), lambda n, j: (n, 0, j))),
        compiler_params=pltpu.CompilerParams(
            dimension_semantics=("parallel", "parallel"),
            vmem_limit_bytes=vmem_limit_bytes),
    )(x, w_bf16, b)
    return out_f32.reshape(N, C, H, W), out_bf16.reshape(N, C, H, W)


def upsample_logsoftmax(seg_bf16, U, UT, *, oh_tile=64, ow_tile=512,
                        out_dtype=jnp.bfloat16,
                        vmem_limit_bytes=64 * 1024 * 1024):
    """seg (N,C,H,W) bf16 -> log-probs (N,C,OH,OW) (fused up + log-softmax)."""
    N, C, H, W = seg_bf16.shape
    OH, OW = U.shape[0], UT.shape[1]
    toh = min(oh_tile, OH)
    if toh < OH:
        toh = max(16, (toh // 16) * 16)     # sublane-friendly (bf16 safe)
    tow = min(ow_tile, OW)
    if tow < OW:
        tow = max(128, (tow // 128) * 128)  # lane-dense, unmasked vst

    return pl.pallas_call(
        _up_logsoftmax_kernel,
        out_shape=jax.ShapeDtypeStruct((N, C, OH, OW), out_dtype),
        grid=(N, pl.cdiv(OH, toh), pl.cdiv(OW, tow)),
        in_specs=[pl.BlockSpec((1, C, H, W), lambda n, j, k: (n, 0, 0, 0)),
                  pl.BlockSpec((toh, H), lambda n, j, k: (j, 0)),
                  pl.BlockSpec((W, tow), lambda n, j, k: (0, k))],
        out_specs=pl.BlockSpec((1, C, toh, tow), lambda n, j, k: (n, 0, j, k)),
        compiler_params=pltpu.CompilerParams(
            dimension_semantics=("parallel", "parallel", "parallel"),
            vmem_limit_bytes=vmem_limit_bytes),
    )(seg_bf16, U, UT)


# ------------------------------------------------------------------- module --
class DRNSegPallas:
    def __init__(self, out_dim, classes, in_hw, key, *,
                 logprob_dtype=jnp.bfloat16,
                 pixel_tile=2048,             # cap near 2048 on v5e
                 oh_tile=64, ow_tile=512,     # sized for v7x's 64 MiB VMEM
                 seg_vmem_limit=32 * 1024 * 1024,
                 up_vmem_limit=64 * 1024 * 1024):
        H, W = in_hw
        self.classes = classes
        self.logprob_dtype = logprob_dtype
        self.pixel_tile = pixel_tile
        self.oh_tile = oh_tile
        self.ow_tile = ow_tile
        self.seg_vmem_limit = seg_vmem_limit
        self.up_vmem_limit = up_vmem_limit
        # nn.Conv2d(out_dim, classes, 1, bias=True) init:
        #   weight ~ N(0, sqrt(2/(kH*kW*classes))), bias = 0.
        # Weights are stored in f32 (the reference); cast to bf16 only at the
        # MXU boundary inside the wrapper.
        std = math.sqrt(2.0 / (1 * 1 * classes))
        self.w_seg = jax.random.normal(key, (classes, out_dim), jnp.float32) * std
        self.b_seg = jnp.zeros((classes, 1), jnp.float32)
        # Frozen bilinear ConvTranspose2d(C, C, 16, s=8, p=4, groups=C) as
        # separable matrices; the bilinear weights (multiples of 1/16) are
        # exactly representable in bf16.
        self.U = jnp.asarray(_make_up_matrix(H)).astype(jnp.bfloat16)      # (OH, H)
        self.UT = jnp.asarray(_make_up_matrix(W).T).astype(jnp.bfloat16)   # (W, OW)

    def __call__(self, x_feat):
        # x_feat: (N, out_dim, H, W)  -- output of self.base (NCHW)
        seg_f32, seg_bf16 = seg_conv1x1(
            x_feat, self.w_seg, self.b_seg,
            pixel_tile=self.pixel_tile, vmem_limit_bytes=self.seg_vmem_limit)
        log_probs = upsample_logsoftmax(
            seg_bf16, self.U, self.UT,
            oh_tile=self.oh_tile, ow_tile=self.ow_tile,
            out_dtype=self.logprob_dtype, vmem_limit_bytes=self.up_vmem_limit)
        return log_probs, seg_f32


# ---------------------------------------------------------------- reference --
def _reference_forward(x_feat, w_seg, b_seg, U, UT):
    hp = jax.lax.Precision.HIGHEST
    seg = (jnp.einsum('co,nohw->nchw', w_seg, x_feat, precision=hp)
           + b_seg.reshape(1, -1, 1, 1))
    up = jnp.einsum('oh,nchw,wp->ncop', U, seg, UT, precision=hp)
    return jax.nn.log_softmax(up, axis=1), seg


# --------------------------------------------------------------------- main --
if __name__ == "__main__":
    N, OUT_DIM, H, W = 2, 8, 16, 16
    CLASSES = 4

    key = jax.random.PRNGKey(0)
    k_x, k_w = jax.random.split(key)
    x_feat = jax.random.normal(k_x, (N, OUT_DIM, H, W), jnp.float32)

    model = DRNSegPallas(out_dim=OUT_DIM, classes=CLASSES, in_hw=(H, W), key=k_w)
    log_probs, seg = jax.block_until_ready(model(x_feat))

    OH, OW = 8 * H, 8 * W
    assert log_probs.shape == (N, CLASSES, OH, OW)
    assert log_probs.dtype == jnp.bfloat16
    assert seg.shape == (N, CLASSES, H, W) and seg.dtype == jnp.float32

    lp = log_probs.astype(jnp.float32)

    # log-softmax sanity: exp sums to 1 over the channel axis.
    sums = jnp.sum(jnp.exp(lp), axis=1)
    assert bool(jnp.all(jnp.abs(sums - 1.0) < 2e-2))

    # Pure-f32 reference (HIGHEST-precision einsums, true f32 weights).
    # Tolerances cover bf16 MXU operands (f32 accumulation), the bf16 seg feed
    # and the bf16 log-prob output (|log p| reaches ~14 here -> ~0.03 quant).
    ref_lp, ref_seg = _reference_forward(
        x_feat, model.w_seg, model.b_seg,
        jnp.asarray(_make_up_matrix(H)), jnp.asarray(_make_up_matrix(W).T))
    assert float(jnp.max(jnp.abs(seg - ref_seg))) < 0.1
    assert float(jnp.max(jnp.abs(lp - ref_lp))) < 0.2

    # Partial-tile path (OH % toh != 0) must agree with the divisible tiling.
    model_pt = DRNSegPallas(out_dim=OUT_DIM, classes=CLASSES, in_hw=(H, W),
                            key=k_w, oh_tile=48)
    lp_pt, _ = jax.block_until_ready(model_pt(x_feat))
    assert float(jnp.max(jnp.abs(lp_pt.astype(jnp.float32) - lp))) < 2e-2

    print("KERNEL_OK")
</pallas_src>

<mosaic_0001>
module attributes {stable_mosaic.version = 11 : i64} {
  func.func @_seg_kernel(%arg0: i32, %arg1: i32, %arg2: memref<1x8x256xf32, #tpu.memory_space<vmem>>, %arg3: memref<4x8xbf16, #tpu.memory_space<vmem>>, %arg4: memref<4x1xf32, #tpu.memory_space<vmem>>, %arg5: memref<1x4x256xf32, #tpu.memory_space<vmem>>, %arg6: memref<1x4x256xbf16, #tpu.memory_space<vmem>>) attributes {dimension_semantics = [#tpu.dimension_semantics<parallel>, #tpu.dimension_semantics<parallel>], iteration_bounds = array<i64: 2, 1>, scalar_prefetch = 0 : i64, scratch_operands = 0 : i64, tpu.core_type = #tpu.core_type<tc>, window_params = [{transform_indices = @transform_0, window_bounds = array<i64: 1, 8, 256>}, {pipeline_mode = #tpu.pipeline_mode<synchronous>, transform_indices = @transform_1, window_bounds = array<i64: 4, 8>}, {pipeline_mode = #tpu.pipeline_mode<synchronous>, transform_indices = @transform_2, window_bounds = array<i64: 4, 1>}, {transform_indices = @transform_3, window_bounds = array<i64: 1, 4, 256>}, {transform_indices = @transform_4, window_bounds = array<i64: 1, 4, 256>}]} {
    %c0 = arith.constant 0 : index
    %c0_0 = arith.constant 0 : index
    %c0_1 = arith.constant 0 : index
    %0 = vector.load %arg2[%c0, %c0_0, %c0_1] : memref<1x8x256xf32, #tpu.memory_space<vmem>>, vector<1x8x256xf32>
    %1 = vector.shape_cast %0 : vector<1x8x256xf32> to vector<8x256xf32>
    %2 = arith.truncf %1 : vector<8x256xf32> to vector<8x256xbf16>
    %c0_2 = arith.constant 0 : index
    %c0_3 = arith.constant 0 : index
    %3 = vector.load %arg3[%c0_2, %c0_3] : memref<4x8xbf16, #tpu.memory_space<vmem>>, vector<4x8xbf16>
    %cst = arith.constant dense<0.000000e+00> : vector<4x256xf32>
    %4 = tpu.matmul %3, %2, %cst {dimension_numbers = #tpu.dot_dimension_numbers<[1], [0], [0], [1], [0, 0, 1, 1], [], []>} : vector<4x8xbf16>, vector<8x256xbf16>, vector<4x256xf32> -> vector<4x256xf32>
    %c0_4 = arith.constant 0 : index
    %c0_5 = arith.constant 0 : index
    %5 = vector.load %arg4[%c0_4, %c0_5] : memref<4x1xf32, #tpu.memory_space<vmem>>, vector<4x1xf32>
    %6 = vector.broadcast %5 : vector<4x1xf32> to vector<4x256xf32>
    %7 = arith.addf %4, %6 : vector<4x256xf32>
    %c0_6 = arith.constant 0 : index
    %c0_7 = arith.constant 0 : index
    %c0_8 = arith.constant 0 : index
    %8 = vector.load %arg5[%c0_6, %c0_7, %c0_8] : memref<1x4x256xf32, #tpu.memory_space<vmem>>, vector<1x4x256xf32>
    %9 = vector.shape_cast %8 : vector<1x4x256xf32> to vector<4x256xf32>
    %10 = vector.shape_cast %7 : vector<4x256xf32> to vector<1x4x256xf32>
    tpu.vector_store %arg5[%c0_6, %c0_7, %c0_8], %10 {strides = array<i32>} : memref<1x4x256xf32, #tpu.memory_space<vmem>>, vector<1x4x256xf32>,
    %11 = arith.truncf %7 : vector<4x256xf32> to vector<4x256xbf16>
    %c0_9 = arith.constant 0 : index
    %c0_10 = arith.constant 0 : index
    %c0_11 = arith.constant 0 : index
    %12 = vector.load %arg6[%c0_9, %c0_10, %c0_11] : memref<1x4x256xbf16, #tpu.memory_space<vmem>>, vector<1x4x256xbf16>
    %13 = vector.shape_cast %12 : vector<1x4x256xbf16> to vector<4x256xbf16>
    %14 = vector.shape_cast %11 : vector<4x256xbf16> to vector<1x4x256xbf16>
    tpu.vector_store %arg6[%c0_9, %c0_10, %c0_11], %14 {strides = array<i32>} : memref<1x4x256xbf16, #tpu.memory_space<vmem>>, vector<1x4x256xbf16>,
    return
  }
  func.func @transform_0(%arg0: i32, %arg1: i32) -> (i32, i32, i32) {
    %c0_i32 = arith.constant 0 : i32
    %c0_i32_0 = arith.constant 0 : i32
    return %arg0, %c0_i32, %arg1 : i32, i32, i32
  }
  func.func @transform_1(%arg0: i32, %arg1: i32) -> (i32, i32) {
    %c0_i32 = arith.constant 0 : i32
    %c0_i32_0 = arith.constant 0 : i32
    %c0_i32_1 = arith.constant 0 : i32
    return %c0_i32, %c0_i32_0 : i32, i32
  }
  func.func @transform_2(%arg0: i32, %arg1: i32) -> (i32, i32) {
    %c0_i32 = arith.constant 0 : i32
    %c0_i32_0 = arith.constant 0 : i32
    %c0_i32_1 = arith.constant 0 : i32
    return %c0_i32, %c0_i32_0 : i32, i32
  }
  func.func @transform_3(%arg0: i32, %arg1: i32) -> (i32, i32, i32) {
    %c0_i32 = arith.constant 0 : i32
    %c0_i32_0 = arith.constant 0 : i32
    return %arg0, %c0_i32, %arg1 : i32, i32, i32
  }
  func.func @transform_4(%arg0: i32, %arg1: i32) -> (i32, i32, i32) {
    %c0_i32 = arith.constant 0 : i32
    %c0_i32_0 = arith.constant 0 : i32
    return %arg0, %c0_i32, %arg1 : i32, i32, i32
  }
}

</mosaic_0001>

<bundles_post_ra>
// kernel: tpu_custom_call.1
= control target key start
LH: loop header
LB: loop body
LE: loop exit
PB: predicated region body
PF: predicated region fallthrough
CT: control target
= control target key end

     0   :  { %10 = vsyncpa [#allocation3], 0  ;;  %s935_s0 = inlined_call_operand.hbm [shape: f32[2,8,256], index: 0, kind: input, shape index: {}]   ;;  %s936_s1 = inlined_call_operand.vmem [shape: bf16[4,8], index: 1, kind: input, shape index: {}]   ;;  %s937_s2 = inlined_call_operand.vmem [shape: f32[4,1], index: 2, kind: input, shape index: {}]   ;;  %s938_s3 = inlined_call_operand.hbm [shape: f32[2,4,256], index: 3, kind: output, shape index: {0}]   ;;  %s939_s4 = inlined_call_operand.hbm [shape: bf16[2,4,256], index: 4, kind: output, shape index: {1}]  }
   0x1   :  { %12 = vsyncpa [#allocation3 + $0x1], 0 }
   0x2   :  { %13 = vsyncpa [#allocation4], 0 }
   0x3   :  { %15 = vsyncpa [#allocation4 + $0x1], 0 }
   0x4   :  { %16 = vsyncpa [#allocation7], 0 }
   0x5   :  { %18 = vsyncpa [#allocation7 + $0x1], 0  ;;  %s752_s15 = smov 0   ;;  %s754_s16 = smov 0  }
   0x6   :  { %s756_s17 = smov 0   ;;  %s758_s18 = smov 0  }
   0x7   :  { %s760_s19 = smov 0   ;;  %s762_s20 = smov 0  }
   0x8 LB: > { %s488_s21 = sadd.s32 4294967295, %s721_s20   ;;  %s489_s22 = sadd.s32 4294967294, %s721_s20   ;;  %s721_s20 = sphi %s762_s20, %s24_s20   ;;  %s717_s19 = sphi %s760_s19, %s951_s19   ;;  %s713_s18 = sphi %s758_s18, %s950_s18   ;;  %s709_s17 = sphi %s756_s17, %s949_s17   ;;  %s705_s16 = sphi %s754_s16, %s948_s16   ;;  %s701_s15 = sphi %s752_s15, %s947_s15  }
   0x9   : > { %s36_s23 = sadd.s32 1, %s717_s19  ;;  %s45_s24 = sadd.s32 1, %s709_s17 }
   0xa   : > { %p38_p0 = scmp.ge.s32.totalorder %s36_s23, 2  ;;  %p52_p1 = scmp.ne.s32.totalorder %s709_s17, %s705_s16 }
   0xb   : > { %p53_p2 = scmp.eq.s32.totalorder %s721_s20, 0  ;;  %p58_p3 = scmp.ne.s32.totalorder %s705_s16, %s701_s15 }
   0xc   : > { %s953_s23 = smov (%p38_p0, %s36_s23), 0  ;;  %p59_p5 = scmp.eq.s32.totalorder %s488_s21, 0 }
   0xd   : > { %p793_p4 = por %p53_p2, %p52_p1  ;;  %s40_s26 = ssub.s32 %s717_s19, %s953_s23 }
   0xe   : > { %p126_p6 = scmp.eq.s32.totalorder %s488_s21, 1  ;;  %p43_p7 = scmp.eq.s32.totalorder %s40_s26, 0 }
   0xf   : > { %p799_p8 = por %p59_p5, %p58_p3  ;;  %p132_p10 = scmp.eq.s32.totalorder %s489_s22, 1 }
  0x10   : > { %p803_p9 = por %p126_p6, %p52_p1  ;;  %p531_p13 = scmp.lt.s32.totalorder %s721_s20, 2 }
  0x11   : > { %s808_s29 = scalar_select %p43_p7, %s709_s17, %s45_s24  }
  0x12   : > { %p810_p11 = por %p132_p10, %p58_p3  ;;  %s186_s5 = sand.u32 1, %s709_s17  }
  0x13   : > { %s492_s6 = sshll.u32 %s186_s5, 4  ;;  %s511_s7 = sshll.u32 %s717_s19, 8 }
  0x14   : > { %s943_s30 = scalar_select %p810_p11, 1, 0 }
  0x15   : > { %s198_s10 = scalar_lea.hbm %s935_s0, %s511_s7  ;;  %s190_s11 = scalar_lea.vmem [#allocation2], %s492_s6 }
  0x16   : > { %s200_s12 = sshll.u32 %s190_s11, 4  ;;  %p823_p0 = pnand %p531_p13, %p793_p4  ;;  %s201_s12 = int_to_ptr.vmem [resolvable:$true] %s200_s12 }
  0x17   : > { %p495_p1 = scmp.ge.s32.totalorder %s721_s20, 1  ;;  %p205_p2 = scmp.lt.s32.totalorder %s721_s20, 3 }
  0x18   : > { %s187_s14 = scalar_lea.sflag [#allocation3], %s186_s5  ;;  %p585_p3 = pneg %p823_p0 }
  0x19   : > { %s596_s21 = scalar_lea.vmem %s201_s12, 256  ;;  %s723_s22 = smov [#allocation2]  }
  0x1a   : > { %p597_p5 = scmp.ne.s32.totalorder %s201_s12, %s596_s21  ;;  %s601_s24 = sshll.u32 %s723_s22, 4  ;;  %s602_s24 = int_to_ptr.vmem [resolvable:$false] %s601_s24 }
  0x1b   : > { %s603_s26 = scalar_lea.vmem %s602_s24, 512  ;;  %p604_p10 = scmp.lt.s32.totalorder %s201_s12, %s602_s24 }
  0x1c   : > { %p599_p6 = pnand %p597_p5, %p585_p3  ;;  %p605_p12 = scmp.lt.s32.totalorder %s603_s26, %s596_s21 }
  0x1e   : > { %p600_p7 = pneg %p599_p6  ;;  %p606_p4 = por %p605_p12, %p604_p10 }
  0x20   : > { %p607_p13 = pnand %p606_p4, %p600_p7 }
  0x22   : > { %610 = shalt.err (!%p607_p13)
}
  0x23   : > { %523 = dma.hbm_to_vmem [thread:$0]  (!%p823_p0), %s198_s10, 256, %s201_s12, %s187_s14  }
  0x24   : > { %p206_p11 = pnand %p495_p1, %p205_p2 }
  0x25   : > { %s838_s25 = sand.u32 (!%p206_p11), 1, %s705_s16  }
  0x26   : > { %209 = sbr.rel (%p206_p11) target bundleno = 285 (0x11d), region = 32  ;;  %s496_s5 = sshll.u32 (!%p206_p11), %s838_s25, 4 }
  0x27   : > { %s212_s6 = scalar_lea.sflag (!%p206_p11), [#allocation3], %s838_s25  ;;  %s215_s7 = scalar_lea.vmem (!%p206_p11), [#allocation2], %s496_s5 }
  0x2b   : > { %688 = dma.done.wait (%p799_p8), %s212_s6, 256  }
  0x2c   : > { %690 = vsyncadd (%p799_p8), %s212_s6, 4294967040  ;;  %v724_v0 = vmov 0   ;;  %v250_v1 = vld [vmem:[%s215_s7 + $0x8] sm:$0xff]  ;;  %vm264_vm0 = vcmask 1043456   ;;  %v249_v2 = vld [vmem:[%s215_s7] sm:$0xff]  ;;  %vm260_vm1 = vcmask 64512  }
  0x2d   : > { %303 = vmatprep.mubr.bf16.mxu0 %v724_v0  ;;  %582 = vset.pattern.permute.xlu0 %v724_v0  ;;  %v252_v3 = vpack.c.bf16 %v250_v1, %v250_v1  ;;  %v251_v4 = vpack.c.bf16 %v249_v2, %v249_v2  ;;  %v254_v5 = vld [vmem:[%s937_s2] sm:$0xf]  ;;  %s497_s11 = sshll.u32 %s838_s25, 3  ;;  %s498_s12 = sshll.u32 %s838_s25, 2 }
  0x2e   : > { %257 = vperm.xlu0 %582, %v254_v5   ;;  %v253_v7 = vld [vmem:[%s936_s1] sm:$0x3]  ;;  %s512_s13 = sshll.u32 %s713_s18, 7  ;;  %s237_s14 = scalar_lea.vmem [#allocation5], %s497_s11 }
  0x2f   : > { %499 = vmatprep.subr.msk.bf16.mxu0 %vm264_vm0, %v252_v3  ;;  %v266_v6 = vsel %vm264_vm0, %v251_v4, 0  ;;  %s353_s21 = sshll.u32 %s237_s14, 4  ;;  %s513_s22 = sshll.u32 %s713_s18, 6  ;;  %s861_s21 = int_to_ptr.vmem [resolvable:$true] %s353_s21 }
  0x30   : > { %286 = vmatpush1.bf16.msra.mxu0 %v266_v6  ;;  %s244_s24 = scalar_lea.vmem [#allocation6], %s498_s12  ;;  %s859_s7 = scalar_lea.hbm %s938_s3, %s512_s13 }
  0x31   : > { %s369_s26 = sshll.u32 %s244_s24, 4  ;;  %s866_s18 = scalar_lea.hbm %s939_s4, %s513_s22  ;;  %s868_s26 = int_to_ptr.vmem [resolvable:$true] %s369_s26 }
  0x32   : > { %s332_s27 = scalar_lea.sflag [#allocation4], %s838_s25  ;;  %s611_s10 = scalar_lea.vmem %s861_s21, 128 }
  0x33   : > { %500 = vmatmul.mubr.msk.bf16.vlgmr.msra.gmra.mxu0 %vm260_vm1, %v253_v7  ;;  %p612_p8 = scmp.ne.s32.totalorder %s861_s21, %s611_s10  ;;  %s725_s11 = smov [#allocation5]  }
  0x34   : > { %s615_s12 = sshll.u32 %s725_s11, 4  ;;  %s616_s12 = int_to_ptr.vmem [resolvable:$false] %s615_s12 }
  0x35   : > { %p613_p11 = pnand %p612_p8, %p803_p9  ;;  %s617_s13 = scalar_lea.vmem %s616_s12, 256 }
  0x36   : > { %p618_p0 = scmp.lt.s32.totalorder %s861_s21, %s616_s12  ;;  %p619_p1 = scmp.lt.s32.totalorder %s617_s13, %s611_s10 }
  0x37   : > { %p614_p12 = pneg %p613_p11 }
  0x38   : > { %p620_p2 = por %p619_p1, %p618_p0 }
  0x3a   : > { %p621_p3 = pnand %p620_p2, %p614_p12 }
  0xa9   : > { %v258_v8 = vpop.permute.xlu0 %257 }
  0xf3   : > { %v305_v9 = vpop.f32.mrf.mxu0 }
  0xf4   : > { %v306_v11 = vadd.f32 %v305_v9, %v258_v8 }
  0xf5   : > { %v307_v10 = vpop.f32.mrf.mxu0 }
  0xf6   : > { %v308_v12 = vadd.f32 %v307_v10, %v258_v8 }
  0xf7   : > { %v309_v13 = vpop.f32.mrf.mxu0 }
  0xf8   : > { %v314_v14 = vcombine.low %v306_v11, %v308_v12  ;;  %v501_v15 = vpack.c.bf16 %v308_v12, %v306_v11 }
  0xf9   : > { %v310_v16 = vpop.f32.mrf.mxu0 }
  0xfa   : > { %316 = vst [vmem:[%s237_s14] sm:$0xff] %v314_v14  ;;  %502 = vst.sshfl [vmem:[%s244_s24] sm:$0x33 pattern:$0x76325410] %v501_v15 }
  0xfb   : > { %624 = shalt.err (!%p621_p3)
}
  0xfc   : > { %s625_s14 = scalar_lea.hbm %s859_s7, 128  ;;  %s629_s5 = scalar_lea.hbm %s938_s3, 256 }
  0xfd   : > { %p626_p5 = scmp.ne.s32.totalorder %s859_s7, %s625_s14  ;;  %p630_p10 = scmp.lt.s32.totalorder %s859_s7, %s938_s3 }
  0xfe   : > { %p631_p4 = scmp.lt.s32.totalorder %s629_s5, %s625_s14 }
  0xff   : > { %p627_p6 = pnand %p626_p5, %p803_p9 }
 0x100   : > { %p632_p13 = por %p631_p4, %p630_p10 }
 0x101   : > { %p628_p7 = pneg %p627_p6 }
 0x103   : > { %p633_p8 = pnand %p632_p13, %p628_p7 }
 0x105   : > { %636 = shalt.err (!%p633_p8)
}
 0x106   : > { %516 = dma.vmem_to_hbm [thread:$0]  (%p803_p9), %s861_s21, 128, %s859_s7, %s332_s27  }
 0x107   : > { %s337_s9 = scalar_lea.sflag [#allocation7], %s838_s25  ;;  %s637_s10 = scalar_lea.vmem %s868_s26, 64 }
 0x108   : > { %p638_p11 = scmp.ne.s32.totalorder %s868_s26, %s637_s10  ;;  %s726_s11 = smov [#allocation6]  }
 0x109   : > { %s641_s12 = sshll.u32 %s726_s11, 4  ;;  %s642_s12 = int_to_ptr.vmem [resolvable:$false] %s641_s12 }
 0x10a   : > { %p639_p12 = pnand %p638_p11, %p803_p9  ;;  %s643_s13 = scalar_lea.vmem %s642_s12, 128 }
 0x10b   : > { %p644_p1 = scmp.lt.s32.totalorder %s868_s26, %s642_s12  ;;  %p645_p2 = scmp.lt.s32.totalorder %s643_s13, %s637_s10 }
 0x10c   : > { %p640_p0 = pneg %p639_p12 }
 0x10d   : > { %p646_p3 = por %p645_p2, %p644_p1 }
 0x10f   : > { %p647_p5 = pnand %p646_p3, %p640_p0 }
 0x111   : > { %650 = shalt.err (!%p647_p5)
}
 0x112   : > { %s651_s21 = scalar_lea.hbm %s866_s18, 64  ;;  %s655_s27 = scalar_lea.hbm %s939_s4, 128 }
 0x113   : > { %p652_p6 = scmp.ne.s32.totalorder %s866_s18, %s651_s21  ;;  %p656_p4 = scmp.lt.s32.totalorder %s866_s18, %s939_s4 }
 0x114   : > { %p657_p13 = scmp.lt.s32.totalorder %s655_s27, %s651_s21 }
 0x115   : > { %p653_p7 = pnand %p652_p6, %p803_p9 }
 0x116   : > { %p658_p8 = por %p657_p13, %p656_p4 }
 0x117   : > { %p654_p10 = pneg %p653_p7 }
 0x119   : > { %p659_p11 = pnand %p658_p8, %p654_p10 }
 0x11b   : > { %662 = shalt.err (!%p659_p11)
}
 0x11c   : > { %517 = dma.vmem_to_hbm [thread:$0]  (%p803_p9), %s868_s26, 64, %s866_s18, %s337_s9  }
 0x11d PF: > { %s381_s24 = sand.u32 1, %s701_s15   ;;  %p945_p12 = scmp.ne.s32.totalorder %s943_s30, 0 }
 0x11e   : > { %p946_p0 = scmp.ge.s32.totalorder %s721_s20, 2  ;;  %s382_s5 = scalar_lea.sflag [#allocation4], %s381_s24 }
 0x120   : > { %p525_p1 = pnand %p946_p0, %p945_p12 }
 0x122   : > { %p526_p2 = pneg %p525_p1 }
 0x124   : > { %692 = dma.done.wait (%p526_p2), %s382_s5, 128  }
 0x125   : > { %694 = vsyncadd (%p526_p2), %s382_s5, 4294967168  ;;  %s391_s6 = scalar_lea.sflag [#allocation7], %s381_s24 }
 0x126   : > { %696 = dma.done.wait (%p526_p2), %s391_s6, 64  }
 0x127   : > { %698 = vsyncadd (%p526_p2), %s391_s6, 4294967232  ;;  %s24_s20 = sadd.s32 1, %s721_s20   ;;  %s947_s15 = smov %s705_s16 }
 0x128   : > { %p21_p3 = scmp.ge.s32.totalorder %s24_s20, 4   ;;  %s948_s16 = smov %s709_s17 }
 0x129   : > { %s949_s17 = smov %s808_s29  ;;  %s950_s18 = smov %s717_s19 }
 0x12a   : > { %s951_s19 = smov %s953_s23  ;;  %23 = sbr.rel (!%p21_p3) target bundleno = 8 (0x8), region = 94 }
 0x12f   :  { %396 = vsyncpa [#allocation3], 1 }
 0x130   :  { %398 = vsyncpa [#allocation3 + $0x1], 1 }
 0x131   :  { %399 = vsyncpa [#allocation4], 1 }
 0x132   :  { %401 = vsyncpa [#allocation4 + $0x1], 1 }
 0x133   :  { %402 = vsyncpa [#allocation7], 1 }
 0x134   :  { %404 = vsyncpa [#allocation7 + $0x1], 1 }

</bundles_post_ra>
